<compile_context>
chip_gen: v7x
topology: tpu7x:2x2x1
jax: 0.10.0
libtpu: 0.0.40
codegen_flags: <defaults>
</compile_context>

<pallas_src>
import functools

import jax
import jax.numpy as jnp
from jax.experimental import pallas as pl
from jax.experimental.pallas import tpu as pltpu

LSTM_H = 128
H1 = H2 = H3 = 64
OBS_CLIP = 100.0

GATE_W = 3 * LSTM_H          # 384 gate columns: [ i | g | o ]
VECP_ROWS = 8                # (8, 128) small-params slab == exactly one f32 vreg
OUT_W = 2 * H3               # 128-wide lane-dense output slab: [ value | a3 ]


def _mlp_policy_kernel(x_ref, w_ih_ref, wmlp_ref, vp_ref, out_ref):
    B = x_ref.shape[0]
    vp = vp_ref[...]                                   # (8, 128) f32 — one vreg

    # --- ObsNorm (fresh stats: mean=0, std=1) + clip ---------------------------
    # TODO(synk): ObsNorm running mean/std updates are stateful and live outside the kernel.
    x = jnp.clip(x_ref[...], -OBS_CLIP, OBS_CLIP)

    # --- LSTM single step, zero initial state (dead f-gate already dropped) ----
    gates = jnp.dot(x.astype(jnp.bfloat16), w_ih_ref[...],
                    preferred_element_type=jnp.float32)          # (B, 384)
    # sigmoid(z) == 0.5*(1+tanh(z/2)): one EUP push instead of exp + reciprocal.
    i_g = 0.5 * (1.0 + jnp.tanh(0.5 * (gates[:, 0:LSTM_H] + vp[0:1, :])))
    g_g = jnp.tanh(gates[:, LSTM_H:2 * LSTM_H] + vp[1:2, :])
    o_g = 0.5 * (1.0 + jnp.tanh(0.5 * (gates[:, 2 * LSTM_H:GATE_W] + vp[2:3, :])))
    h = o_g * jnp.tanh(i_g * g_g)                      # c = i*g since c0 = 0

    # --- actor MLP trunk: weights zero-padded to full (128,128) tiles ----------
    # w1p  cols 64:128 are zero  -> a1 lanes 64:128 = tanh(0) = 0
    # w23p rows 64:128 are zero  -> junk lanes of a2 never reach the contraction
    w1p = wmlp_ref[:, 0:LSTM_H]                        # (128, 128) bf16
    w23p = wmlp_ref[:, LSTM_H:2 * LSTM_H]              # (128, 128) bf16
    a1 = jnp.tanh(jnp.dot(h.astype(jnp.bfloat16), w1p,
                          preferred_element_type=jnp.float32) + vp[3:4, :])
    a2 = jnp.tanh(jnp.dot(a1.astype(jnp.bfloat16), w23p,
                          preferred_element_type=jnp.float32) + vp[4:5, :])
    a3f = jnp.tanh(jnp.dot(a2.astype(jnp.bfloat16), w23p,
                           preferred_element_type=jnp.float32) + vp[5:6, :])
    # a3 sits in lanes 64:128 (its natural matmul position); lanes 0:64 are bounded junk.

    # --- value head on VPU/XLU: vp row 6 has w4 in lanes 64:128, zeros elsewhere
    value = jnp.sum(a3f * vp[6:7, :], axis=-1, keepdims=True)    # (B, 1)
    val_full = value + vp[7:8, :]                      # b4 replicated across all lanes

    # --- single unmasked lane-dense (B, 128) store: value in 0:64, a3 in 64:128
    lane = jax.lax.broadcasted_iota(jnp.int32, (B, OUT_W), 1)
    out_ref[...] = jnp.where(lane >= H3, a3f, val_full)


def _choose_batch_tile(B):
    # Small batches: one grid step (full-array block is always legal).
    # Large batches: >=256-row tiles to amortize the 256-deep MXU on v6e/v7x
    # (also a multiple of v5e's 128x128 MXU); fall back to smaller divisors.
    if B <= 256:
        return B
    for bt in (256, 128, 64, 32, 16, 8):
        if B % bt == 0:
            return bt
    return B  # ragged batch: single grid step


@functools.partial(jax.jit, static_argnames=("batch_tile",))
def mlp_policy_forward(x, params, batch_tile=None):
    B, num_inputs = x.shape
    bt = batch_tile if batch_tile is not None else _choose_batch_tile(B)
    if bt != B:
        assert B % bt == 0 and bt % 8 == 0, "batch_tile must divide B and be a multiple of 8"

    cost = pl.CostEstimate(
        flops=2 * B * (num_inputs * GATE_W + 3 * LSTM_H * LSTM_H),
        transcendentals=7 * B * LSTM_H,
        bytes_accessed=(x.size * 4 + params["w_ih3"].size * 2
                        + params["wmlp"].size * 2 + params["vecp"].size * 4
                        + B * OUT_W * 4),
    )

    slab = pl.pallas_call(
        _mlp_policy_kernel,
        out_shape=jax.ShapeDtypeStruct((B, OUT_W), jnp.float32),
        grid=(pl.cdiv(B, bt),),
        in_specs=[
            pl.BlockSpec((bt, num_inputs), lambda i: (i, 0)),          # batch-tiled input
            pl.BlockSpec((num_inputs, GATE_W), lambda i: (0, 0)),      # VMEM-resident weights
            pl.BlockSpec((LSTM_H, 2 * LSTM_H), lambda i: (0, 0)),
            pl.BlockSpec((VECP_ROWS, LSTM_H), lambda i: (0, 0)),
        ],
        out_specs=pl.BlockSpec((bt, OUT_W), lambda i: (i, 0)),
        compiler_params=pltpu.CompilerParams(dimension_semantics=("parallel",)),
        cost_estimate=cost,
    )(x, params["w_ih3"], params["wmlp"], params["vecp"])

    # Downstream consumers can read `slab` directly (value at lane 0, features at 64:128);
    # these slices only preserve the (value, features) API of the PyTorch module.
    value = slab[:, 0:1]
    feat = slab[:, H3:OUT_W]
    return value, feat


def _row_normalized_linear(key, out_dim, in_dim):
    """weights_init_mlp: W ~ N(0,1), each row scaled to unit L2 norm; bias = 0.

    Returns weight transposed to (in_dim, out_dim) for x @ W use, bias as (out_dim,).
    """
    w = jax.random.normal(key, (out_dim, in_dim), jnp.float32)
    w = w / jnp.sqrt(jnp.sum(w * w, axis=1, keepdims=True))
    b = jnp.zeros((out_dim,), jnp.float32)
    return w.T, b


def init_params(key, num_inputs):
    keys = jax.random.split(key, 8)

    # LSTM params: PyTorch default init U(-1/sqrt(H), 1/sqrt(H)); gate order [i|f|g|o].
    bound = 1.0 / jnp.sqrt(jnp.float32(LSTM_H))
    w_ih = jax.random.uniform(keys[0], (4 * LSTM_H, num_inputs), jnp.float32, -bound, bound)
    b_ih = jax.random.uniform(keys[1], (4 * LSTM_H,), jnp.float32, -bound, bound)
    b_hh = jax.random.uniform(keys[2], (4 * LSTM_H,), jnp.float32, -bound, bound)
    b_lstm = b_ih + b_hh                       # h0 = 0, so only the biases of W_hh matter.

    # Drop the dead f-gate (c0 = 0): keep only i / g / o rows -> 384 instead of 512.
    keep = jnp.concatenate(
        [jnp.arange(0, LSTM_H), jnp.arange(2 * LSTM_H, 4 * LSTM_H)])
    w_ih_used = w_ih[keep]                     # (384, num_inputs)
    b_gates = b_lstm[keep]                     # (384,)

    # MLP (weights_init_mlp): row-normalized normal weights, zero biases.
    w1, b1 = _row_normalized_linear(keys[3], H1, LSTM_H)    # (128, 64)
    w2, b2 = _row_normalized_linear(keys[4], H2, H1)        # (64, 64)
    w3, b3 = _row_normalized_linear(keys[5], H3, H2)        # (64, 64)
    w4, b4 = _row_normalized_linear(keys[6], 1, H3)         # (64, 1)

    # Zero-pad to full (128,128) lane-dense tiles and fuse into one bf16 slab.
    w1_pad = jnp.zeros((LSTM_H, LSTM_H), jnp.float32).at[:, :H1].set(w1)
    w23 = jnp.concatenate([w2, w3], axis=1)                  # (64, 128): [ w2 | w3 ]
    w23_pad = jnp.zeros((LSTM_H, LSTM_H), jnp.float32).at[:H1, :].set(w23)
    wmlp = jnp.concatenate([w1_pad, w23_pad], axis=1).astype(jnp.bfloat16)  # (128, 256)

    # Small params: every segment on its own 128-lane-aligned row of an (8,128) slab.
    vecp = jnp.zeros((VECP_ROWS, LSTM_H), jnp.float32)
    vecp = vecp.at[0:3, :].set(b_gates.reshape(3, LSTM_H))   # rows 0..2: i / g / o biases
    vecp = vecp.at[3, 0:H1].set(b1)                          # row 3: b1 in lanes 0:64
    vecp = vecp.at[4, 0:H2].set(b2)                          # row 4: b2 in lanes 0:64
    vecp = vecp.at[5, H2:2 * H2].set(b3)                     # row 5: b3 in lanes 64:128
    vecp = vecp.at[6, H3:2 * H3].set(w4[:, 0])               # row 6: w4 in lanes 64:128
    vecp = vecp.at[7, :].set(b4[0])                          # row 7: b4 replicated

    return {
        "w_ih3": w_ih_used.T.astype(jnp.bfloat16),           # (num_inputs, 384) bf16
        "wmlp": wmlp,                                        # (128, 256) bf16
        "vecp": vecp,                                        # (8, 128) f32
    }


def reference_forward(x, params):
    """Pure-JAX reference mirroring the kernel's math (same bf16 operands, f32 accumulate)."""
    vp = params["vecp"]
    wmlp = params["wmlp"]
    w1p = wmlp[:, 0:LSTM_H]
    w23p = wmlp[:, LSTM_H:2 * LSTM_H]

    xc = jnp.clip(x, -OBS_CLIP, OBS_CLIP)
    gates = jnp.dot(xc.astype(jnp.bfloat16), params["w_ih3"],
                    preferred_element_type=jnp.float32)
    i_g = 0.5 * (1.0 + jnp.tanh(0.5 * (gates[:, 0:LSTM_H] + vp[0])))
    g_g = jnp.tanh(gates[:, LSTM_H:2 * LSTM_H] + vp[1])
    o_g = 0.5 * (1.0 + jnp.tanh(0.5 * (gates[:, 2 * LSTM_H:GATE_W] + vp[2])))
    h = o_g * jnp.tanh(i_g * g_g)

    a1 = jnp.tanh(jnp.dot(h.astype(jnp.bfloat16), w1p,
                          preferred_element_type=jnp.float32) + vp[3])
    a2 = jnp.tanh(jnp.dot(a1.astype(jnp.bfloat16), w23p,
                          preferred_element_type=jnp.float32) + vp[4])
    a3f = jnp.tanh(jnp.dot(a2.astype(jnp.bfloat16), w23p,
                           preferred_element_type=jnp.float32) + vp[5])

    value = jnp.sum(a3f * vp[6], axis=-1, keepdims=True) + vp[7, 0]
    feat = a3f[:, H3:2 * H3]
    return value, feat


if __name__ == "__main__":
    B = 16
    NUM_INPUTS = 32

    key = jax.random.PRNGKey(0)
    k_x, k_p = jax.random.split(key)
    x = jax.random.normal(k_x, (B, NUM_INPUTS), jnp.float32)
    params = init_params(k_p, NUM_INPUTS)

    # batch_tile=8 exercises the batch grid (2 steps) with VMEM-resident weights;
    # production callers just pass the full rollout batch and let the tile auto-pick.
    value, feat = mlp_policy_forward(x, params, batch_tile=8)
    value, feat = jax.block_until_ready((value, feat))

    # Sanity check against the pure-JAX reference (same bf16/f32 math path).
    ref_value, ref_feat = reference_forward(x, params)
    assert value.shape == (B, 1) and feat.shape == (B, H3)
    assert jnp.allclose(value, ref_value, atol=2e-4, rtol=2e-4)
    assert jnp.allclose(feat, ref_feat, atol=2e-4, rtol=2e-4)

    print("KERNEL_OK")
</pallas_src>

<mosaic_0001>
module attributes {stable_mosaic.version = 11 : i64} {
  func.func @_mlp_policy_kernel(%arg0: i32, %arg1: memref<8x32xf32, #tpu.memory_space<vmem>>, %arg2: memref<32x384xbf16, #tpu.memory_space<vmem>>, %arg3: memref<128x256xbf16, #tpu.memory_space<vmem>>, %arg4: memref<8x128xf32, #tpu.memory_space<vmem>>, %arg5: memref<8x128xf32, #tpu.memory_space<vmem>>) attributes {dimension_semantics = [#tpu.dimension_semantics<parallel>], iteration_bounds = array<i64: 2>, scalar_prefetch = 0 : i64, scratch_operands = 0 : i64, tpu.core_type = #tpu.core_type<tc>, window_params = [{transform_indices = @transform_0, window_bounds = array<i64: 8, 32>}, {pipeline_mode = #tpu.pipeline_mode<synchronous>, transform_indices = @transform_1, window_bounds = array<i64: 32, 384>}, {pipeline_mode = #tpu.pipeline_mode<synchronous>, transform_indices = @transform_2, window_bounds = array<i64: 128, 256>}, {pipeline_mode = #tpu.pipeline_mode<synchronous>, transform_indices = @transform_3, window_bounds = array<i64: 8, 128>}, {transform_indices = @transform_4, window_bounds = array<i64: 8, 128>}]} {
    %c0 = arith.constant 0 : index
    %c0_0 = arith.constant 0 : index
    %0 = vector.load %arg4[%c0, %c0_0] : memref<8x128xf32, #tpu.memory_space<vmem>>, vector<8x128xf32>
    %c0_1 = arith.constant 0 : index
    %c0_2 = arith.constant 0 : index
    %1 = vector.load %arg1[%c0_1, %c0_2] : memref<8x32xf32, #tpu.memory_space<vmem>>, vector<8x32xf32>
    %cst = arith.constant -1.000000e+02 : f32
    %cst_3 = arith.constant 1.000000e+02 : f32
    %2 = vector.broadcast %cst : f32 to vector<8x32xf32>
    %3 = arith.maximumf %2, %1 : vector<8x32xf32>
    %4 = vector.broadcast %cst_3 : f32 to vector<8x32xf32>
    %5 = arith.minimumf %4, %3 : vector<8x32xf32>
    %6 = arith.truncf %5 : vector<8x32xf32> to vector<8x32xbf16>
    %c0_4 = arith.constant 0 : index
    %c0_5 = arith.constant 0 : index
    %7 = vector.load %arg2[%c0_4, %c0_5] : memref<32x384xbf16, #tpu.memory_space<vmem>>, vector<32x384xbf16>
    %cst_6 = arith.constant dense<0.000000e+00> : vector<8x384xf32>
    %8 = tpu.matmul %6, %7, %cst_6 {dimension_numbers = #tpu.dot_dimension_numbers<[1], [0], [0], [1], [0, 0, 1, 1], [], []>} : vector<8x32xbf16>, vector<32x384xbf16>, vector<8x384xf32> -> vector<8x384xf32>
    %9 = vector.extract_strided_slice %8 {offsets = [0, 0], sizes = [8, 128], strides = [1, 1]} : vector<8x384xf32> to vector<8x128xf32>
    %10 = vector.extract_strided_slice %0 {offsets = [0, 0], sizes = [1, 128], strides = [1, 1]} : vector<8x128xf32> to vector<1x128xf32>
    %11 = vector.broadcast %10 : vector<1x128xf32> to vector<8x128xf32>
    %12 = arith.addf %9, %11 : vector<8x128xf32>
    %cst_7 = arith.constant 5.000000e-01 : f32
    %13 = vector.broadcast %cst_7 : f32 to vector<8x128xf32>
    %14 = arith.mulf %13, %12 : vector<8x128xf32>
    %15 = math.tanh %14 : vector<8x128xf32>
    %cst_8 = arith.constant 1.000000e+00 : f32
    %16 = vector.broadcast %cst_8 : f32 to vector<8x128xf32>
    %17 = arith.addf %16, %15 : vector<8x128xf32>
    %cst_9 = arith.constant 5.000000e-01 : f32
    %18 = vector.broadcast %cst_9 : f32 to vector<8x128xf32>
    %19 = arith.mulf %18, %17 : vector<8x128xf32>
    %20 = vector.extract_strided_slice %8 {offsets = [0, 128], sizes = [8, 128], strides = [1, 1]} : vector<8x384xf32> to vector<8x128xf32>
    %21 = vector.extract_strided_slice %0 {offsets = [1, 0], sizes = [1, 128], strides = [1, 1]} : vector<8x128xf32> to vector<1x128xf32>
    %22 = vector.broadcast %21 : vector<1x128xf32> to vector<8x128xf32>
    %23 = arith.addf %20, %22 : vector<8x128xf32>
    %24 = math.tanh %23 : vector<8x128xf32>
    %25 = vector.extract_strided_slice %8 {offsets = [0, 256], sizes = [8, 128], strides = [1, 1]} : vector<8x384xf32> to vector<8x128xf32>
    %26 = vector.extract_strided_slice %0 {offsets = [2, 0], sizes = [1, 128], strides = [1, 1]} : vector<8x128xf32> to vector<1x128xf32>
    %27 = vector.broadcast %26 : vector<1x128xf32> to vector<8x128xf32>
    %28 = arith.addf %25, %27 : vector<8x128xf32>
    %cst_10 = arith.constant 5.000000e-01 : f32
    %29 = vector.broadcast %cst_10 : f32 to vector<8x128xf32>
    %30 = arith.mulf %29, %28 : vector<8x128xf32>
    %31 = math.tanh %30 : vector<8x128xf32>
    %cst_11 = arith.constant 1.000000e+00 : f32
    %32 = vector.broadcast %cst_11 : f32 to vector<8x128xf32>
    %33 = arith.addf %32, %31 : vector<8x128xf32>
    %cst_12 = arith.constant 5.000000e-01 : f32
    %34 = vector.broadcast %cst_12 : f32 to vector<8x128xf32>
    %35 = arith.mulf %34, %33 : vector<8x128xf32>
    %36 = arith.mulf %19, %24 : vector<8x128xf32>
    %37 = math.tanh %36 : vector<8x128xf32>
    %38 = arith.mulf %35, %37 : vector<8x128xf32>
    %c0_13 = arith.constant 0 : index
    %c0_14 = arith.constant 0 : index
    %39 = vector.load %arg3[%c0_13, %c0_14] : memref<128x256xbf16, #tpu.memory_space<vmem>>, vector<128x128xbf16>
    %c0_15 = arith.constant 0 : index
    %c128 = arith.constant 128 : index
    %40 = vector.load %arg3[%c0_15, %c128] : memref<128x256xbf16, #tpu.memory_space<vmem>>, vector<128x128xbf16>
    %41 = arith.truncf %38 : vector<8x128xf32> to vector<8x128xbf16>
    %cst_16 = arith.constant dense<0.000000e+00> : vector<8x128xf32>
    %42 = tpu.matmul %41, %39, %cst_16 {dimension_numbers = #tpu.dot_dimension_numbers<[1], [0], [0], [1], [0, 0, 1, 1], [], []>} : vector<8x128xbf16>, vector<128x128xbf16>, vector<8x128xf32> -> vector<8x128xf32>
    %43 = vector.extract_strided_slice %0 {offsets = [3, 0], sizes = [1, 128], strides = [1, 1]} : vector<8x128xf32> to vector<1x128xf32>
    %44 = vector.broadcast %43 : vector<1x128xf32> to vector<8x128xf32>
    %45 = arith.addf %42, %44 : vector<8x128xf32>
    %46 = math.tanh %45 : vector<8x128xf32>
    %47 = arith.truncf %46 : vector<8x128xf32> to vector<8x128xbf16>
    %cst_17 = arith.constant dense<0.000000e+00> : vector<8x128xf32>
    %48 = tpu.matmul %47, %40, %cst_17 {dimension_numbers = #tpu.dot_dimension_numbers<[1], [0], [0], [1], [0, 0, 1, 1], [], []>} : vector<8x128xbf16>, vector<128x128xbf16>, vector<8x128xf32> -> vector<8x128xf32>
    %49 = vector.extract_strided_slice %0 {offsets = [4, 0], sizes = [1, 128], strides = [1, 1]} : vector<8x128xf32> to vector<1x128xf32>
    %50 = vector.broadcast %49 : vector<1x128xf32> to vector<8x128xf32>
    %51 = arith.addf %48, %50 : vector<8x128xf32>
    %52 = math.tanh %51 : vector<8x128xf32>
    %53 = arith.truncf %52 : vector<8x128xf32> to vector<8x128xbf16>
    %cst_18 = arith.constant dense<0.000000e+00> : vector<8x128xf32>
    %54 = tpu.matmul %53, %40, %cst_18 {dimension_numbers = #tpu.dot_dimension_numbers<[1], [0], [0], [1], [0, 0, 1, 1], [], []>} : vector<8x128xbf16>, vector<128x128xbf16>, vector<8x128xf32> -> vector<8x128xf32>
    %55 = vector.extract_strided_slice %0 {offsets = [5, 0], sizes = [1, 128], strides = [1, 1]} : vector<8x128xf32> to vector<1x128xf32>
    %56 = vector.broadcast %55 : vector<1x128xf32> to vector<8x128xf32>
    %57 = arith.addf %54, %56 : vector<8x128xf32>
    %58 = math.tanh %57 : vector<8x128xf32>
    %59 = vector.extract_strided_slice %0 {offsets = [6, 0], sizes = [1, 128], strides = [1, 1]} : vector<8x128xf32> to vector<1x128xf32>
    %60 = vector.broadcast %59 : vector<1x128xf32> to vector<8x128xf32>
    %61 = arith.mulf %58, %60 : vector<8x128xf32>
    %cst_19 = arith.constant dense<0.000000e+00> : vector<8xf32>
    %62 = vector.multi_reduction <add>, %61, %cst_19 [1] : vector<8x128xf32> to vector<8xf32>
    %63 = vector.shape_cast %62 : vector<8xf32> to vector<8x1xf32>
    %64 = vector.extract_strided_slice %0 {offsets = [7, 0], sizes = [1, 128], strides = [1, 1]} : vector<8x128xf32> to vector<1x128xf32>
    %65 = vector.broadcast %63 : vector<8x1xf32> to vector<8x128xf32>
    %66 = vector.broadcast %64 : vector<1x128xf32> to vector<8x128xf32>
    %67 = arith.addf %65, %66 : vector<8x128xf32>
    %68 = tpu.iota {dimensions = array<i32: 1>} : vector<8x128xi32>
    %c64_i32 = arith.constant 64 : i32
    %69 = vector.broadcast %c64_i32 : i32 to vector<8x128xi32>
    %70 = arith.cmpi sge, %68, %69 : vector<8x128xi32>
    %71 = arith.select %70, %58, %67 : vector<8x128xi1>, vector<8x128xf32>
    %c0_20 = arith.constant 0 : index
    %c0_21 = arith.constant 0 : index
    %72 = vector.load %arg5[%c0_20, %c0_21] : memref<8x128xf32, #tpu.memory_space<vmem>>, vector<8x128xf32>
    tpu.vector_store %arg5[%c0_20, %c0_21], %71 {strides = array<i32>} : memref<8x128xf32, #tpu.memory_space<vmem>>, vector<8x128xf32>,
    return
  }
  func.func @transform_0(%arg0: i32) -> (i32, i32) {
    %c0_i32 = arith.constant 0 : i32
    %c0_i32_0 = arith.constant 0 : i32
    return %arg0, %c0_i32 : i32, i32
  }
  func.func @transform_1(%arg0: i32) -> (i32, i32) {
    %c0_i32 = arith.constant 0 : i32
    %c0_i32_0 = arith.constant 0 : i32
    %c0_i32_1 = arith.constant 0 : i32
    return %c0_i32, %c0_i32_0 : i32, i32
  }
  func.func @transform_2(%arg0: i32) -> (i32, i32) {
    %c0_i32 = arith.constant 0 : i32
    %c0_i32_0 = arith.constant 0 : i32
    %c0_i32_1 = arith.constant 0 : i32
    return %c0_i32, %c0_i32_0 : i32, i32
  }
  func.func @transform_3(%arg0: i32) -> (i32, i32) {
    %c0_i32 = arith.constant 0 : i32
    %c0_i32_0 = arith.constant 0 : i32
    %c0_i32_1 = arith.constant 0 : i32
    return %c0_i32, %c0_i32_0 : i32, i32
  }
  func.func @transform_4(%arg0: i32) -> (i32, i32) {
    %c0_i32 = arith.constant 0 : i32
    %c0_i32_0 = arith.constant 0 : i32
    return %arg0, %c0_i32 : i32, i32
  }
}

</mosaic_0001>

<bundles_post_ra>
// kernel: mlp_policy_forward.1
= control target key start
LH: loop header
LB: loop body
LE: loop exit
PB: predicated region body
PF: predicated region fallthrough
CT: control target
= control target key end

     0   :  { %9 = vsyncpa [#allocation3], 0  ;;  %s1488_s0 = inlined_call_operand.hbm [shape: f32[16,32], index: 0, kind: input, shape index: {}]   ;;  %s1489_s1 = inlined_call_operand.hbm [shape: bf16[32,384], index: 1, kind: input, shape index: {}]   ;;  %s1490_s2 = inlined_call_operand.hbm [shape: bf16[128,256], index: 2, kind: input, shape index: {}]   ;;  %s1491_s3 = inlined_call_operand.hbm [shape: f32[8,128], index: 3, kind: input, shape index: {}]   ;;  %s1492_s4 = inlined_call_operand.vmem [shape: f32[16,128], index: 4, kind: output, shape index: {}]  }
   0x1   :  { %11 = vsyncpa [#allocation3 + $0x1], 0 }
   0x2   :  { %12 = vsyncpa [#allocation5], 0 }
   0x3   :  { %13 = vsyncpa [#allocation8], 0  ;;  %s1238_s15 = smov 0   ;;  %s1240_s16 = smov 0  }
   0x4   :  { %s1242_s17 = smov 0   ;;  %s1244_s18 = smov 0  }
   0x5 LB: > { %s1257_s19 = sadd.s32 4294967295, %s1200_s18   ;;  %p39_p0 = scmp.ne.s32.totalorder %s1192_s16, %s1188_s15  ;;  %s1200_s18 = sphi %s1244_s18, %s1510_s18   ;;  %s1196_s17 = sphi %s1242_s17, %s1509_s17   ;;  %s1192_s16 = sphi %s1240_s16, %s1508_s16   ;;  %s1188_s15 = sphi %s1238_s15, %s1507_s15  }
   0x6   : > { %p1493_p1 = scmp.eq.s32.totalorder %s1257_s19, 0  ;;  %p791_p2 = scmp.ge.s32.totalorder %s1200_s18, 1 }
   0x7   : > { %p139_p3 = scmp.lt.s32.totalorder %s1200_s18, 3  ;;  %s1202_s22 = smov [#allocation4]  }
   0x8   : > { %p1265_p4 = por %p1493_p1, %p39_p0  ;;  %s151_s23 = sshll.u32 %s1202_s22, 4  ;;  %s152_s23 = int_to_ptr.vmem [resolvable:$true] %s151_s23 }
   0x9   : > { %p1269_p5 = pnand %p791_p2, %p139_p3  ;;  %s1203_s25 = smov [#allocation6]  }
   0xa   : > { %s1496_s20 = scalar_select %p1265_p4, 1, 0 }
   0xb   : > { %s1497_s21 = scalar_select %p1269_p5, 1, 0 }
   0xc   : > { %p943_p6 = pneg %p1269_p5  ;;  %s164_s26 = sshll.u32 %s1203_s25, 4  ;;  %s1281_s26 = int_to_ptr.vmem [resolvable:$true] %s164_s26 }
   0xd   : > { %s1044_s29 = scalar_lea.hbm %s1489_s1, 768 }
   0xe   : > { %p1277_p7 = pnand %p943_p6, %p1493_p1  ;;  %p1045_p8 = scmp.ne.s32.totalorder %s1489_s1, %s1044_s29 }
   0xf   : > { %p1051_p12 = scmp.lt.u32.totalorder %s1044_s29, %s1489_s1 }
  0x10   : > { %p1291_p9 = pneg %p1277_p7 }
  0x12   : > { %p1047_p10 = pnand %p1291_p9, %p1045_p8 }
  0x14   : > { %p1048_p11 = pneg %p1047_p10 }
  0x16   : > { %p1053_p13 = pnand %p1051_p12, %p1048_p11 }
  0x18   : > { %1056 = shalt.err (!%p1053_p13)
}
  0x19   : > { %s1057_s9 = scalar_lea.vmem %s152_s23, 768  ;;  %p1065_p6 = scmp.lt.s32.totalorder %s152_s23, %s152_s23 }
  0x1a   : > { %p1058_p0 = scmp.ne.s32.totalorder %s152_s23, %s1057_s9  ;;  %p1066_p1 = scmp.lt.s32.totalorder %s1057_s9, %s1057_s9 }
  0x1c   : > { %p1060_p2 = pnand %p1058_p0, %p1291_p9  ;;  %p1067_p4 = por %p1066_p1, %p1065_p6 }
  0x1e   : > { %p1061_p3 = pneg %p1060_p2 }
  0x20   : > { %p1068_p5 = pnand %p1067_p4, %p1061_p3 }
  0x22   : > { %1071 = shalt.err (!%p1068_p5)
}
  0x23   : > { %s1204_s10 = smov 192   ;;  %s1205_s11 = smov 12  }
  0x24   : > { %946 = dma.hbm_to_vmem [thread:$0]  (!%p1277_p7), %s1489_s1, 768, %s152_s23, [#allocation5], %s1204_s10, %s1204_s10, %s1205_s11  }
  0x25   : > { %s1072_s22 = scalar_lea.hbm %s1490_s2, 2048 }
  0x26   : > { %p1073_p8 = scmp.ne.s32.totalorder %s1490_s2, %s1072_s22  ;;  %p1079_p5 = scmp.lt.u32.totalorder %s1072_s22, %s1490_s2 }
  0x28   : > { %p1075_p1 = pnand %p1073_p8, %p1291_p9 }
  0x2a   : > { %p1076_p4 = pneg %p1075_p1 }
  0x2c   : > { %p1081_p10 = pnand %p1079_p5, %p1076_p4 }
  0x2e   : > { %1084 = shalt.err (!%p1081_p10)
}
  0x2f   : > { %s1085_s23 = scalar_lea.vmem %s1281_s26, 2048  ;;  %p1093_p0 = scmp.lt.s32.totalorder %s1281_s26, %s1281_s26 }
  0x30   : > { %p1086_p11 = scmp.ne.s32.totalorder %s1281_s26, %s1085_s23  ;;  %p1094_p2 = scmp.lt.s32.totalorder %s1085_s23, %s1085_s23 }
  0x32   : > { %p1088_p12 = pnand %p1086_p11, %p1291_p9  ;;  %p1095_p3 = por %p1094_p2, %p1093_p0 }
  0x34   : > { %p1089_p13 = pneg %p1088_p12 }
  0x36   : > { %p1096_p6 = pnand %p1095_p3, %p1089_p13 }
  0x38   : > { %1099 = shalt.err (!%p1096_p6)
}
  0x39   : > { %s1206_s30 = smov 128   ;;  %s1207_s5 = smov 8  }
  0x3a   : > { %949 = dma.hbm_to_vmem [thread:$0]  (!%p1277_p7), %s1490_s2, 2048, %s1281_s26, [#allocation5], %s1206_s30, %s1206_s30, %s1207_s5  }
  0x3b   : > { %s1208_s9 = smov [#allocation7]   ;;  %s1331_s11 = sadd.s32 1, %s1200_s18  }
  0x3c   : > { %s178_s10 = sshll.u32 %s1208_s9, 4  ;;  %s1100_s14 = scalar_lea.hbm %s1491_s3, 128  ;;  %s179_s10 = int_to_ptr.vmem [resolvable:$true] %s178_s10 }
  0x3d   : > { %p1101_p8 = scmp.ne.s32.totalorder %s1491_s3, %s1100_s14  ;;  %p1107_p5 = scmp.lt.u32.totalorder %s1100_s14, %s1491_s3 }
  0x3f   : > { %p1103_p1 = pnand %p1101_p8, %p1291_p9 }
  0x41   : > { %p1104_p4 = pneg %p1103_p1 }
  0x43   : > { %p1109_p10 = pnand %p1107_p5, %p1104_p4 }
  0x45   : > { %1112 = shalt.err (!%p1109_p10)
}
  0x46   : > { %s1113_s26 = scalar_lea.vmem %s179_s10, 128  ;;  %p1121_p0 = scmp.lt.s32.totalorder %s179_s10, %s179_s10 }
  0x47   : > { %p1114_p11 = scmp.ne.s32.totalorder %s179_s10, %s1113_s26  ;;  %p1122_p2 = scmp.lt.s32.totalorder %s1113_s26, %s1113_s26 }
  0x49   : > { %p1116_p12 = pnand %p1114_p11, %p1291_p9  ;;  %p1123_p3 = por %p1122_p2, %p1121_p0 }
  0x4b   : > { %p1117_p13 = pneg %p1116_p12 }
  0x4d   : > { %p1124_p6 = pnand %p1123_p3, %p1117_p13 }
  0x4f   : > { %1127 = shalt.err (!%p1124_p6)
}
  0x50   : > { %952 = dma.hbm_to_vmem [thread:$0]  (!%p1277_p7), %s1491_s3, 128, %s179_s10, [#allocation8]  }
  0x51   : > { %s23_s6 = ssub.s32 %s1200_s18, %s1331_s11  ;;  %s26_s23 = sadd.s32 1, %s1196_s17 }
  0x52   : > { %p24_p9 = scmp.eq.s32.totalorder %s23_s6, 0  ;;  %p33_p8 = scmp.ne.s32.totalorder %s1196_s17, %s1192_s16 }
  0x53   : > { %p34_p1 = scmp.eq.s32.totalorder %s1200_s18, 0  ;;  %p960_p4 = scmp.lt.s32.totalorder %s1200_s18, 2 }
  0x54   : > { %s1359_s24 = scalar_select %p24_p9, %s1196_s17, %s26_s23  }
  0x55   : > { %p35_p5 = por %p34_p1, %p33_p8  ;;  %s189_s30 = sand.u32 1, %s1196_s17  }
  0x56   : > { %s796_s5 = sshll.u32 %s189_s30, 3  ;;  %s797_s7 = sshll.u32 %s1200_s18, 7 }
  0x57   : > { %s1366_s12 = scalar_lea.hbm %s1488_s0, %s797_s7  ;;  %s193_s10 = scalar_lea.vmem [#allocation2], %s796_s5 }
  0x58   : > { %s200_s13 = sshll.u32 %s193_s10, 4  ;;  %p1370_p7 = pnand %p960_p4, %p35_p5  ;;  %s1368_s13 = int_to_ptr.vmem [resolvable:$true] %s200_s13 }
  0x59   : > { %s190_s18 = scalar_lea.sflag [#allocation3], %s189_s30  ;;  %s1128_s15 = scalar_lea.hbm %s1366_s12, 128 }
  0x5a   : > { %p1129_p10 = scmp.ne.s32.totalorder %s1366_s12, %s1128_s15  ;;  %p1130_p11 = pneg %p1370_p7 }
  0x5b   : > { %s1133_s27 = scalar_lea.hbm %s1488_s0, 256  ;;  %p1134_p0 = scmp.lt.u32.totalorder %s1366_s12, %s1488_s0 }
  0x5c   : > { %p1131_p12 = pnand %p1130_p11, %p1129_p10  ;;  %p1135_p2 = scmp.lt.u32.totalorder %s1133_s27, %s1128_s15 }
  0x5d   : > { %p1137_p6 = scmp.lt.u32.totalorder %s1128_s15, %s1366_s12 }
  0x5e   : > { %p1132_p13 = pneg %p1131_p12  ;;  %p1136_p3 = por %p1135_p2, %p1134_p0 }
  0x60   : > { %p1138_p9 = por %p1137_p6, %p1136_p3 }
  0x62   : > { %p1139_p8 = pnand %p1138_p9, %p1132_p13 }
  0x64   : > { %1142 = shalt.err (!%p1139_p8)
}
  0x65   : > { %s1143_s29 = scalar_lea.vmem %s1368_s13, 128  ;;  %s1209_s6 = smov [#allocation2]  }
  0x66   : > { %p1144_p1 = scmp.ne.s32.totalorder %s1368_s13, %s1143_s29  ;;  %s1148_s23 = sshll.u32 %s1209_s6, 4  ;;  %s1149_s23 = int_to_ptr.vmem [resolvable:$false] %s1148_s23 }
  0x67   : > { %s1150_s30 = scalar_lea.vmem %s1149_s23, 256  ;;  %p1151_p10 = scmp.lt.s32.totalorder %s1368_s13, %s1149_s23 }
  0x68   : > { %p1146_p4 = pnand %p1144_p1, %p1130_p11  ;;  %p1152_p12 = scmp.lt.s32.totalorder %s1150_s30, %s1143_s29 }
  0x6a   : > { %p1147_p5 = pneg %p1146_p4  ;;  %p1153_p0 = por %p1152_p12, %p1151_p10 }
  0x6c   : > { %p1154_p2 = pnand %p1153_p0, %p1147_p5 }
  0x6e   : > { %1157 = shalt.err (!%p1154_p2)
}
  0x6f   : > { %956 = dma.hbm_to_vmem [thread:$0]  (!%p1370_p7), %s1366_s12, 128, %s1368_s13, %s190_s18  }
  0x70   : > { %p1501_p13 = scmp.ne.s32.totalorder %s1497_s21, 0 }
  0x71   : > { %s211_s5 = sand.u32 (!%p1501_p13), 1, %s1192_s16   ;;  %p1502_p11 = scmp.ne.s32.totalorder (!%p1501_p13), %s1496_s20, 0 }
  0x72   : > { %209 = sbr.rel (%p1501_p13) target bundleno = 1213 (0x4bd), region = 36  ;;  %s799_s7 = sshll.u32 (!%p1501_p13), %s211_s5, 3 }
  0x73   : > { %s212_s8 = scalar_lea.sflag (!%p1501_p13), [#allocation3], %s211_s5  ;;  %s215_s9 = scalar_lea.vmem (!%p1501_p13), [#allocation2], %s799_s7 }
  0x79   : > { %1175 = dma.done.wait (%p1502_p11), %s212_s8, 128  }
  0x7a   : > { %1177 = vsyncadd (%p1502_p11), %s212_s8, 4294967168  ;;  %p1503_p3 = scmp.eq.s32.totalorder %s1257_s19, 0 }
  0x7c   : > { %1179 = dma.done.wait (%p1503_p3), [#allocation5], 2816   ;;  %p1504_p6 = pmov %p1503_p3 }
  0x7d   : > { %p1505_p7 = pmov %p1503_p3 }
  0x7e   : > { %1181 = vsyncadd (%p1504_p6), [#allocation5], 4294964480 }
  0x7f   : > { %1183 = dma.done.wait (%p1505_p7), [#allocation8], 128   ;;  %p1506_p9 = pmov %p1503_p3 }
  0x80   : > { %v1210_v0 = vmov 0   ;;  %v1211_v1 = vmov 0.0   ;;  %vm1212_vm0 = vmmov 0   ;;  %v1006_v2 = vld [vmem:[#allocation4 + $0x4] ss:$12 sps:$4 sm:$0xff]   ;;  %vm301_vm1 = vcmask 261120  }
  0x81   : > { %1185 = vsyncadd (%p1506_p9), [#allocation8], 4294967168  ;;  %337 = vmatprep.mubr.bf16.mxu1 %v1210_v0  ;;  %869 = vmatprep.subr.bf16.mxu0 %v1211_v1  ;;  %v1008_v3 = vld [vmem:[#allocation4] ss:$12 sps:$4 sm:$0xff]   ;;  %v1009_v4 = vld [vmem:[#allocation4 + $0x1c] ss:$12 sps:$4 sm:$0xff]   ;;  %v386_v23 = vlaneseq }
  0x82   : > { %885 = vmatprep.mubr.msk.bf16.mxu0 %vm1212_vm0, %v1211_v1  ;;  %305 = vmatprep.subr.bf16.mxu1 %v1006_v2  ;;  %v1011_v5 = vld [vmem:[#allocation4 + $0x18] ss:$12 sps:$4 sm:$0xff]   ;;  %v1012_v8 = vld [vmem:[#allocation4 + $0x8] ss:$12 sps:$4 sm:$0xff]   ;;  %v1013_v10 = vld [vmem:[#allocation4 + $0x20] ss:$12 sps:$4 sm:$0xff]  }
  0x83   : > { %v257_v6 = vld [vmem:[%s215_s9] sm:$0xff]  ;;  %306 = vmatpush1.bf16.msra.mxu1 %v1008_v3  ;;  %v1015_v12 = vld [vmem:[#allocation6 + $0x10] ss:$8 sps:$4 sm:$0xff]   ;;  %v1023_v20 = vld [vmem:[#allocation6 + $0x14] ss:$8 sps:$4 sm:$0xff]   ;;  %v1437_v24 = vshrl.u32 %v386_v23, 7 }
  0x84   : > { %v804_v7 = vclamps-f32 %v257_v6, 100.0  ;;  %307 = vmatprep.subr.bf16.mxu1 %v1009_v4  ;;  %v1014_v11 = vld [vmem:[#allocation6] ss:$8 sps:$4 sm:$0xff]   ;;  %v1017_v14 = vld [vmem:[#allocation6 + $0x30] ss:$8 sps:$4 sm:$0xff]   ;;  %p251_p8 = scmp.lt.s32.totalorder %s1257_s19, 1 }
  0x85   : > { %870 = vmatpush3.bf16.msra.mxu0 %v1014_v11  ;;  %v1016_v13 = vld [vmem:[#allocation6 + $0x20] ss:$8 sps:$4 sm:$0xff]   ;;  %v1019_v16 = vld [vmem:[#allocation6 + $0x50] ss:$8 sps:$4 sm:$0xff]   ;;  %v1022_v19 = vld [vmem:[#allocation6 + $0x4] ss:$8 sps:$4 sm:$0xff]  }
  0x86   : > { %v260_v9 = vpack.c.bf16 %v804_v7, %v804_v7  ;;  %871 = vmatprep.subr.bf16.mxu0 %v1211_v1  ;;  %v1018_v15 = vld [vmem:[#allocation6 + $0x40] ss:$8 sps:$4 sm:$0xff]   ;;  %v1021_v18 = vld [vmem:[#allocation6 + $0x70] ss:$8 sps:$4 sm:$0xff]   ;;  %v1024_v21 = vld [vmem:[#allocation6 + $0x24] ss:$8 sps:$4 sm:$0xff]  }
  0x87   : > { %308 = vmatpush1.bf16.msra.mxu1 %v1011_v5  ;;  %v1020_v17 = vld [vmem:[#allocation6 + $0x60] ss:$8 sps:$4 sm:$0xff]   ;;  %v1025_v22 = vld [vmem:[#allocation6 + $0x34] ss:$8 sps:$4 sm:$0xff]   ;;  %v388_v25 = vsub.s32 0, %v1437_v24  ;;  %v397_v28 = vsub.s32 1, %v1437_v24 }
  0x88   : > { %861 = vmatprep.subr.bf16.mxu1 %v1211_v1  ;;  %v1440_v26 = vld [vmem:[#allocation7] sm:$0xff]  ;;  %v403_v33 = vsub.s32 2, %v1437_v24  ;;  %v1027_v57 = vld [vmem:[#allocation6 + $0x54] ss:$8 sps:$4 sm:$0xff]   ;;  %v448_v60 = vsub.s32 3, %v1437_v24  ;;  %v542_v6 = vsub.s32 4, %v1437_v24 }
  0x89   : > { %872 = vmatpush3.bf16.msra.mxu0 %v1015_v12  ;;  %v389_v27 = vrot.slane %v1440_v26, %v388_v25  ;;  %v398_v32 = vrot.slane %v1440_v26, %v397_v28  ;;  %v1026_v56 = vld [vmem:[#allocation6 + $0x44] ss:$8 sps:$4 sm:$0xff]   ;;  %v1029_v59 = vld [vmem:[#allocation6 + $0x74] ss:$8 sps:$4 sm:$0xff]   ;;  %v688_v28 = vsub.s32 7, %v1437_v24  ;;  %s1512_s19 = smov (!%p251_p8, %s1257_s19), 1 }
  0x8a   : > { %811 = vmatmul.mubr.msk.bf16.vlgmr.msra.gmra.mrb[0].mxu1 %vm301_vm1, %v260_v9  ;;  %873 = vmatprep.subr.bf16.mxu0 %v1211_v1  ;;  %v404_v38 = vrot.slane %v1440_v26, %v403_v33  ;;  %v1028_v58 = vld [vmem:[#allocation6 + $0x64] ss:$8 sps:$4 sm:$0xff]   ;;  %v449_v61 = vrot.slane %v1440_v26, %v448_v60  ;;  %s803_s20 = sshll.u32 %s1512_s19, 3 }
  0x8b   : > { %862 = vmatpush3.bf16.msra.mxu1 %v1012_v8  ;;  %865 = vmatprep.mubr.msk.bf16.mxu1 %vm1212_vm0, %v1211_v1  ;;  %s254_s10 = scalar_lea.vmem %s1492_s4, %s803_s20 }
  0x8c   : > { %863 = vmatprep.subr.bf16.mxu1 %v1211_v1 }
  0x8d   : > { %874 = vmatpush3.bf16.msra.mxu0 %v1016_v13 }
  0x8e   : > { %875 = vmatprep.subr.bf16.mxu0 %v1211_v1 }
  0x8f   : > { %864 = vmatpush3.bf16.msra.mxu1 %v1013_v10 }
  0x90   : > { %889 = vmatprep.subr.bf16.mxu1 %v1211_v1 }
  0x91   : > { %876 = vmatpush3.bf16.msra.mxu0 %v1017_v14  ;;  %v636_v14 = vsub.s32 5, %v1437_v24 }
  0x92   : > { %866 = vmatmul.mubr.msk.bf16.vlgmr.msra.gmra.mrb[4].mxu1 %vm301_vm1, %v260_v9  ;;  %877 = vmatprep.subr.bf16.mxu0 %v1211_v1 }
  0x93   : > { %905 = vmatprep.mubr.msk.bf16.mxu1 %vm1212_vm0, %v1211_v1  ;;  %890 = vmatpush3.bf16.msra.mxu1 %v1022_v19 }
  0x94   : > { %891 = vmatprep.subr.bf16.mxu1 %v1211_v1 }
  0x95   : > { %878 = vmatpush3.bf16.msra.mxu0 %v1018_v15  ;;  %v637_v15 = vrot.slane %v1440_v26, %v636_v14 }
  0x96   : > { %879 = vmatprep.subr.bf16.mxu0 %v1211_v1 }
  0x97   : > { %892 = vmatpush3.bf16.msra.mxu1 %v1023_v20 }
  0x98   : > { %893 = vmatprep.subr.bf16.mxu1 %v1211_v1 }
  0x99   : > { %880 = vmatpush3.bf16.msra.mxu0 %v1019_v16 }
  0x9a   : > { %881 = vmatprep.subr.bf16.mxu0 %v1211_v1 }
  0x9b   : > { %894 = vmatpush3.bf16.msra.mxu1 %v1024_v21 }
  0x9c   : > { %895 = vmatprep.subr.bf16.mxu1 %v1211_v1 }
  0x9d   : > { %882 = vmatpush3.bf16.msra.mxu0 %v1020_v17 }
  0x9e   : > { %883 = vmatprep.subr.bf16.mxu0 %v1211_v1 }
  0x9f   : > { %896 = vmatpush3.bf16.msra.mxu1 %v1025_v22 }
  0xa0   : > { %897 = vmatprep.subr.bf16.mxu1 %v1211_v1 }
  0xa1   : > { %884 = vmatpush3.bf16.msra.mxu0 %v1021_v18 }
  0xa2   : > { %909 = vmatprep.subr.bf16.mxu0 %v1211_v1 }
  0xa3   : > { %898 = vmatpush3.bf16.msra.mxu1 %v1026_v56 }
  0xa4   : > { %899 = vmatprep.subr.bf16.mxu1 %v1211_v1 }
  0xa7   : > { %900 = vmatpush3.bf16.msra.mxu1 %v1027_v57 }
  0xa8   : > { %901 = vmatprep.subr.bf16.mxu1 %v1211_v1 }
  0xab   : > { %902 = vmatpush3.bf16.msra.mxu1 %v1028_v58 }
  0xac   : > { %903 = vmatprep.subr.bf16.mxu1 %v1211_v1 }
  0xaf   : > { %904 = vmatpush3.bf16.msra.mxu1 %v1029_v59 }
 0x15d   : > { %v339_v29 = vpop.f32.mrb[0].mxu1 }
 0x15e   : > { %v390_v30 = vadd.f32 %v389_v27, %v339_v29  ;;  %v341_v31 = vpop.f32.mrb[1].mxu1  ;;  %v692_v29 = vand.u32 127, %v386_v23 }
 0x15f   : > { %v343_v34 = vpop.f32.mrb[2].mxu1  ;;  %v399_v37 = vadd.f32 %v398_v32, %v341_v31 }
 0x160   : > { %v391_v35 = vmul.f32 0.5, %v390_v30  ;;  %v344_v36 = vpop.f32.mrb[3].mxu1  ;;  %v689_v30 = vrot.slane %v1440_v26, %v688_v28  ;;  %vm693_vm2 = vcmp.ge.s32.totalorder %v692_v29, 64 }
 0x162   : > { %1030 = vtanh.f32 %v391_v35 }
 0x163   : > { %1032 = vtanh.f32 %v399_v37 }
 0x165   : > { %v380_v39 = vpop.f32.mrb[4].mxu1 }
 0x166   : > { %v405_v40 = vadd.f32 %v404_v38, %v380_v39  ;;  %v867_v41 = vpop.f32.mrb[5].mxu1 }
 0x167   : > { %v383_v42 = vpop.f32.mrb[6].mxu1 }
 0x168   : > { %v406_v43 = vmul.f32 0.5, %v405_v40  ;;  %v868_v44 = vpop.f32.mrb[7].mxu1 }
 0x16a   : > { %1034 = vtanh.f32 %v406_v43 }
 0x16c   : > { %v1031_v45 = vpop.eup %1030 }
 0x16d   : > { %v393_v46 = vadd.f32 1.0, %v1031_v45  ;;  %v1033_v48 = vpop.eup %1032 }
 0x16f   : > { %v394_v47 = vmul.f32 0.5, %v393_v46 }
 0x171   : > { %v410_v49 = vmul.f32 %v1033_v48, %v394_v47 }
 0x173   : > { %1036 = vtanh.f32 %v410_v49 }
 0x174   : > { %v1035_v50 = vpop.eup %1034 }
 0x175   : > { %v408_v51 = vadd.f32 1.0, %v1035_v50 }
 0x177   : > { %v409_v52 = vmul.f32 0.5, %v408_v51 }
 0x17d   : > { %v1037_v53 = vpop.eup %1036 }
 0x17e   : > { %v412_v54 = vmul.f32 %v1037_v53, %v409_v52 }
 0x180   : > { %v445_v55 = vpack.c.bf16 %v412_v54, %v412_v54 }
 0x182   : > { %886 = vmatmul.mubr.bf16.vlgmr.msra.gmra.mrb[0].mxu0 %v445_v55 }
 0x183   : > { %910 = vmatpush3.bf16.msra.mxu0 %v1022_v19  ;;  %925 = vmatprep.mubr.msk.bf16.mxu0 %vm1212_vm0, %v1211_v1 }
 0x184   : > { %911 = vmatprep.subr.bf16.mxu0 %v1211_v1 }
 0x187   : > { %912 = vmatpush3.bf16.msra.mxu0 %v1023_v20 }
 0x188   : > { %913 = vmatprep.subr.bf16.mxu0 %v1211_v1 }
 0x18b   : > { %914 = vmatpush3.bf16.msra.mxu0 %v1024_v21  ;;  %v681_v21 = vsub.s32 6, %v1437_v24 }
 0x18c   : > { %915 = vmatprep.subr.bf16.mxu0 %v1211_v1 }
 0x18f   : > { %916 = vmatpush3.bf16.msra.mxu0 %v1025_v22  ;;  %v682_v22 = vrot.slane %v1440_v26, %v681_v21 }
 0x190   : > { %917 = vmatprep.subr.bf16.mxu0 %v1211_v1 }
 0x193   : > { %918 = vmatpush3.bf16.msra.mxu0 %v1026_v56 }
 0x194   : > { %919 = vmatprep.subr.bf16.mxu0 %v1211_v1 }
 0x197   : > { %920 = vmatpush3.bf16.msra.mxu0 %v1027_v57 }
 0x198   : > { %921 = vmatprep.subr.bf16.mxu0 %v1211_v1 }
 0x19b   : > { %922 = vmatpush3.bf16.msra.mxu0 %v1028_v58 }
 0x19c   : > { %923 = vmatprep.subr.bf16.mxu0 %v1211_v1  ;;  %v543_v1 = vrot.slane %v1440_v26, %v542_v6 }
 0x19f   : > { %924 = vmatpush3.bf16.msra.mxu0 %v1029_v59 }
 0x255   : > { %v532_v62 = vpop.f32.mrb[0].mxu0 }
 0x256   : > { %v533_v63 = vadd.f32 %v532_v62, %v449_v61  ;;  %v887_v0 = vpop.f32.mrb[1].mxu0 }
 0x257   : > { %v535_v2 = vpop.f32.mrb[2].mxu0 }
 0x258   : > { %1038 = vtanh.f32 %v533_v63  ;;  %v888_v3 = vpop.f32.mrb[3].mxu0 }
 0x262   : > { %v1039_v4 = vpop.eup %1038 }
 0x263   : > { %v539_v5 = vpack.c.bf16 %v1039_v4, %v1039_v4 }
 0x265   : > { %906 = vmatmul.mubr.bf16.vlgmr.msra.gmra.mrb[8].mxu1 %v539_v5 }
 0x338   : > { %v626_v7 = vpop.f32.mrb[8].mxu1 }
 0x339   : > { %v627_v8 = vadd.f32 %v626_v7, %v543_v1  ;;  %v907_v9 = vpop.f32.mrb[9].mxu1 }
 0x33a   : > { %v629_v10 = vpop.f32.mrb[10].mxu1 }
 0x33b   : > { %1040 = vtanh.f32 %v627_v8  ;;  %v908_v11 = vpop.f32.mrb[11].mxu1 }
 0x345   : > { %v1041_v12 = vpop.eup %1040 }
 0x346   : > { %v633_v13 = vpack.c.bf16 %v1041_v12, %v1041_v12 }
 0x348   : > { %926 = vmatmul.mubr.bf16.vlgmr.msra.gmra.mrb[4].mxu0 %v633_v13 }
 0x41b   : > { %v672_v16 = vpop.f32.mrb[4].mxu0 }
 0x41c   : > { %v673_v17 = vadd.f32 %v672_v16, %v637_v15  ;;  %v927_v18 = vpop.f32.mrb[5].mxu0 }
 0x41d   : > { %v675_v19 = vpop.f32.mrb[6].mxu0 }
 0x41e   : > { %1042 = vtanh.f32 %v673_v17  ;;  %v928_v20 = vpop.f32.mrb[7].mxu0 }
 0x428   : > { %v1043_v25 = vpop.eup %1042 }
 0x429   : > { %v683_v27 = vmul.f32 %v1043_v25, %v682_v22 }
 0x42b   : > { %684 = vadd.xlane.f32.xlu0 %v683_v27 }
 0x4b8   : > { %v685_v31 = vpop.xlane.xlu0 %684 }
 0x4b9   : > { %v690_v32 = vadd.f32 %v689_v30, %v685_v31 }
 0x4bb   : > { %v694_v33 = vsel %vm693_vm2, %v1043_v25, %v690_v32 }
 0x4bc   : > { %695 = vst [vmem:[%s254_s10] sm:$0xff] %v694_v33 }
 0x4bd PF: > { %p16_p1 = scmp.ge.s32.totalorder %s1331_s11, 4   ;;  %s1507_s15 = smov %s1192_s16 }
 0x4be   : > { %s1508_s16 = smov %s1196_s17  ;;  %s1509_s17 = smov %s1359_s24 }
 0x4bf   : > { %s1510_s18 = smov %s1331_s11  ;;  %18 = sbr.rel (!%p16_p1) target bundleno = 5 (0x5), region = 88 }
 0x4c6   :  { %715 = vsyncpa [#allocation3], 1 }
 0x4c7   :  { %717 = vsyncpa [#allocation3 + $0x1], 1 }
 0x4c8   :  { %718 = vsyncpa [#allocation5], 1 }
 0x4c9   :  { %719 = vsyncpa [#allocation8], 1 }

</bundles_post_ra>
